<compile_context>
chip_gen: v5e
topology: v5e:2x2
jax: 0.10.0
libtpu: 0.0.40
codegen_flags: <defaults>
</compile_context>

<pallas_src>
import functools

import jax
import jax.numpy as jnp
from jax import lax
from jax.experimental import pallas as pl
from jax.experimental.pallas import tpu as pltpu


def _round_up(x, m):
    return ((x + m - 1) // m) * m


# ----------------------------- Pallas kernel --------------------------------
def tcn_fused_kernel(x_ref, w1_ref, b1_ref, w2_ref, b2_ref, o_ref, xpad_ref, *,
                     kernel_size, dilations, has_ds, pad_rows, cpad, cout_pad,
                     use_im2col):
    """Fused TemporalConvNet forward for one batch block.

    x_ref   : (Bblk, pad_rows + Lp, Cpad) compute dtype, causally pre-padded
    w1_ref  : (NL, K*Cpad, Cw)   b1_ref: (NL, 1, Cw)   (biases f32)
              Cw = 2*Cpad if any layer has a 1x1 downsample (fused into conv1)
    w2_ref  : (NL, K*Cpad, Cpad) b2_ref: (NL, 1, Cpad)
    o_ref   : (Bblk, Lp, cout_pad) compute dtype
    xpad_ref: VMEM scratch (Bblk, pad_rows + Lp, Cpad), compute dtype
    """
    K = kernel_size
    n_layers = len(dilations)
    Bblk, Lp, _ = o_ref.shape
    rows = Bblk * Lp

    # Top `pad_rows` rows of the activation scratch stay zero for the whole
    # kernel: they are the causal left padding for every dilated tap.  Zeroed
    # unconditionally — scratch is per-core & uninitialized, and under
    # "parallel" megacore sharding program_id(0)==0 only runs on one core.
    if pad_rows > 0:
        xpad_ref[:, :pad_rows, :] = jnp.zeros((Bblk, pad_rows, cpad),
                                              xpad_ref.dtype)

    def causal_conv(src_ref, w_ref, b_ref, layer, d, ncols):
        """One dilated causal conv over the causally padded src_ref."""
        bias = b_ref[layer, :, :ncols]                          # (1, ncols) f32
        if use_im2col:
            # im2col: K shifted views concatenated along lanes -> ONE wide MXU
            # matmul (rows, K*Cpad) @ (K*Cpad, ncols).  Best when Cpad >= 256.
            taps = [src_ref[:, pad_rows - (K - 1 - k) * d:
                               pad_rows - (K - 1 - k) * d + Lp, :]
                    for k in range(K)]
            a = taps[0] if K == 1 else jnp.concatenate(taps, axis=-1)
            a = a.reshape(rows, K * cpad)
            out = jnp.dot(a, w_ref[layer, :, :ncols],
                          preferred_element_type=jnp.float32)
        else:
            # Cpad == 128 path: K per-tap MXU dots accumulated in f32 — avoids
            # materializing/storing the (rows, K*Cpad) im2col temp.
            out = jnp.zeros((rows, ncols), jnp.float32)
            for k in range(K):
                tap = src_ref[:, pad_rows - (K - 1 - k) * d:
                                 pad_rows - (K - 1 - k) * d + Lp, :]
                out = out + jnp.dot(
                    tap.reshape(rows, cpad),
                    w_ref[layer, k * cpad:(k + 1) * cpad, :ncols],
                    preferred_element_type=jnp.float32)
        return out + bias                                       # (rows, ncols) f32

    # TODO(synk): for very deep TCNs switch to lax.fori_loop with dynamic
    #             w1_ref[layer] indexing to bound vreg live ranges.
    for layer in range(n_layers):
        d = dilations[layer]
        ds = has_ds[layer]
        ncols1 = 2 * cpad if ds else cpad
        src = x_ref if layer == 0 else xpad_ref

        # conv1 -> chomp -> relu (dropout1 == identity).  When the layer has a
        # 1x1 downsample it is fused in as the last Cpad output columns.
        pre = causal_conv(src, w1_ref, b1_ref, layer, d, ncols1)
        if ds:
            h1 = jnp.maximum(pre[:, :cpad], 0.0)
            res = pre[:, cpad:]                                 # downsample(x)+bd
        else:
            h1 = jnp.maximum(pre, 0.0)
            res = src[:, pad_rows:, :].reshape(rows, cpad).astype(jnp.float32)

        # res is captured above, so the activation scratch can be overwritten
        # with conv2's (causally padded) input.
        xpad_ref[:, pad_rows:, :] = h1.reshape(Bblk, Lp, cpad).astype(xpad_ref.dtype)

        # conv2 -> chomp -> relu (dropout2 == identity)
        h2 = jnp.maximum(causal_conv(xpad_ref, w2_ref, b2_ref, layer, d, cpad),
                         0.0)

        y = jnp.maximum(h2 + res, 0.0)                          # (rows, Cpad) f32
        if layer == n_layers - 1:
            o_ref[...] = (y.reshape(Bblk, Lp, cpad)[:, :, :cout_pad]
                          .astype(o_ref.dtype))
        else:
            xpad_ref[:, pad_rows:, :] = y.reshape(Bblk, Lp, cpad).astype(xpad_ref.dtype)


# --------------------------- parameter preparation ---------------------------
def weight_norm_effective(v, g):
    # PyTorch weight_norm(dim=0): w = g * v / ||v||, norm over (Cin, K) per Cout.
    norm = jnp.sqrt(jnp.sum(v * v, axis=(1, 2), keepdims=True))
    return g * v / norm


def init_tcn_params(key, num_inputs, num_channels, kernel_size):
    """Deterministic synthetic parameters, PyTorch layout (Cout, Cin, K)."""
    params = []
    for i, out_ch in enumerate(num_channels):
        in_ch = num_inputs if i == 0 else num_channels[i - 1]
        key, *ks = jax.random.split(key, 9)
        v1 = 0.01 * jax.random.normal(ks[0], (out_ch, in_ch, kernel_size), jnp.float32)
        g1 = 1.0 + 0.1 * jax.random.uniform(ks[1], (out_ch, 1, 1), jnp.float32)
        b1 = 0.01 * jax.random.normal(ks[2], (out_ch,), jnp.float32)
        v2 = 0.01 * jax.random.normal(ks[3], (out_ch, out_ch, kernel_size), jnp.float32)
        g2 = 1.0 + 0.1 * jax.random.uniform(ks[4], (out_ch, 1, 1), jnp.float32)
        b2 = 0.01 * jax.random.normal(ks[5], (out_ch,), jnp.float32)
        if in_ch != out_ch:
            wd = 0.01 * jax.random.normal(ks[6], (out_ch, in_ch, 1), jnp.float32)
            bd = 0.01 * jax.random.normal(ks[7], (out_ch,), jnp.float32)
        else:
            wd, bd = None, None
        params.append((weight_norm_effective(v1, g1), b1,
                       weight_norm_effective(v2, g2), b2, wd, bd))
    return params


def prepare_tcn_kernel_params(params, num_inputs, kernel_size,
                              compute_dtype=jnp.bfloat16):
    """One-time weight prep: transpose to (K, Cin, Cout), zero-pad channels to a
    lane-dense Cpad (multiple of 128), fold the K taps into (K*Cpad, Cpad),
    fuse the 1x1 downsample (when present) as extra conv1 output columns, and
    stack across layers so the whole network fits one pallas_call.
    bf16 is the default compute dtype (f32 MXU accumulation in the kernel)."""
    K = kernel_size
    n_layers = len(params)
    chans = [num_inputs] + [p[0].shape[0] for p in params]
    Cpad = _round_up(max(chans), 128)
    any_ds = any(p[4] is not None for p in params)

    def conv_w(w):                        # (Cout, Cin, K) -> (K*Cpad, Cpad)
        wt = jnp.transpose(w, (2, 1, 0))  # (K, Cin, Cout): tap k == w[:, :, k].T
        wt = jnp.pad(wt, ((0, 0),
                          (0, Cpad - wt.shape[1]),
                          (0, Cpad - wt.shape[2])))
        return wt.reshape(K * Cpad, Cpad)

    def pad_b(b):                         # (Cout,) -> (1, Cpad)
        return jnp.pad(b, (0, Cpad - b.shape[0]))[None, :]

    W1s, B1s, W2s, B2s, has_ds = [], [], [], [], []
    for (w1, b1, w2, b2, wd, bd) in params:
        cout, cin, _ = w1.shape
        w1e, b1e = conv_w(w1), pad_b(b1)
        if wd is not None:
            # Fuse the 1x1 downsample as the last Cpad output columns of conv1;
            # only the current-timestep tap (k = K-1) rows are nonzero.
            wdt = jnp.transpose(wd[:, :, 0], (1, 0))          # (Cin, Cout)
            wdt = jnp.pad(wdt, ((0, Cpad - wdt.shape[0]),
                                (0, Cpad - wdt.shape[1])))
            wd_full = jnp.zeros((K * Cpad, Cpad), jnp.float32)
            wd_full = wd_full.at[(K - 1) * Cpad:, :].set(wdt)
            w1e = jnp.concatenate([w1e, wd_full], axis=1)     # (K*Cpad, 2*Cpad)
            b1e = jnp.concatenate([b1e, pad_b(bd)], axis=1)   # (1, 2*Cpad)
            has_ds.append(True)
        else:
            assert cin == cout, "identity residual requires Cin == Cout"
            if any_ds:   # keep a uniform stacked width; extra columns are zero
                w1e = jnp.pad(w1e, ((0, 0), (0, Cpad)))
                b1e = jnp.pad(b1e, ((0, 0), (0, Cpad)))
            has_ds.append(False)
        W1s.append(w1e)
        B1s.append(b1e)
        W2s.append(conv_w(w2))
        B2s.append(pad_b(b2))

    return dict(
        W1s=jnp.stack(W1s).astype(compute_dtype),   # (NL, K*Cpad, Cw)
        B1s=jnp.stack(B1s).astype(jnp.float32),     # (NL, 1, Cw)
        W2s=jnp.stack(W2s).astype(compute_dtype),   # (NL, K*Cpad, Cpad)
        B2s=jnp.stack(B2s).astype(jnp.float32),     # (NL, 1, Cpad)
        has_ds=tuple(has_ds),
        dilations=tuple(2 ** i for i in range(n_layers)),
        Cpad=Cpad,
        cout_last=chans[-1],
        kernel_size=K,
        compute_dtype=compute_dtype,
    )


def _pick_batch_block(B, rows_per_batch, target_rows=512):
    """Largest divisor of B with ~<= target_rows sublanes per step, but always
    leaving >= 2 grid steps when B >= 2 so the 'parallel' batch axis can be
    sharded across v7x's two TensorCores."""
    bblk = max(1, min(B, max(1, target_rows // max(rows_per_batch, 1))))
    if B >= 2:
        bblk = min(bblk, max(1, B // 2))
    while B % bblk:
        bblk -= 1
    return bblk


def _estimate_vmem_bytes(prepped, Bblk, Lp, pad_rows, cout_pad):
    """Rough resident-VMEM estimate for the fused kernel."""
    it = jnp.dtype(prepped["compute_dtype"]).itemsize
    Cpad = prepped["Cpad"]
    K = prepped["kernel_size"]
    rows = Bblk * Lp
    # stacked weights/biases (pipeline double-buffers constant-index operands;
    # TODO(synk): single-buffer / stream per layer on v7x to halve this)
    weights = 2 * sum(int(prepped[k].size) * prepped[k].dtype.itemsize
                      for k in ("W1s", "B1s", "W2s", "B2s"))
    x_blocks = 2 * Bblk * (pad_rows + Lp) * Cpad * it    # double-buffered input
    o_blocks = 2 * Bblk * Lp * cout_pad * it             # double-buffered output
    scratch = Bblk * (pad_rows + Lp) * Cpad * it         # persistent activation
    temps = rows * K * Cpad * it + 6 * rows * Cpad * 4   # im2col + f32 epilogue
    return weights + x_blocks + o_blocks + scratch + temps


# ------------------------------ forward wrapper -------------------------------
def tcn_forward_pallas(x_ncl, prepped):
    """TemporalConvNet forward.  x_ncl: (B, C, L) like PyTorch; returns (B, C_last, L) f32."""
    B, Cin, L = x_ncl.shape
    Cpad = prepped["Cpad"]
    K = prepped["kernel_size"]
    dils = prepped["dilations"]
    cdtype = prepped["compute_dtype"]
    itemsize = jnp.dtype(cdtype).itemsize

    # sublane packing: 8 rows/vreg for f32, 16 for bf16
    sub = 8 * (4 // itemsize)
    Lp = _round_up(L, sub)
    maxpad = (K - 1) * max(dils)
    pad_rows = _round_up(maxpad, sub) if maxpad > 0 else 0
    cout_pad = _round_up(prepped["cout_last"], 128)   # lane-dense, not network-wide Cpad

    # NCL -> (B, L, C); pre-pad the causal zero rows + time/channel padding in
    # HBM so layer 0 consumes its block in place (no x -> xpad copy in-kernel).
    x = jnp.transpose(x_ncl, (0, 2, 1))
    x = jnp.pad(x, ((0, 0), (pad_rows, Lp - L), (0, Cpad - Cin)))
    x = x.astype(cdtype)                              # (B, pad_rows + Lp, Cpad)

    Bblk = _pick_batch_block(B, Lp)
    grid = (B // Bblk,)

    vmem_est = _estimate_vmem_bytes(prepped, Bblk, Lp, pad_rows, cout_pad)
    if vmem_est > 56 * 1024 * 1024:
        # TODO(synk): implement time-axis tiling with a (K-1)*max(dilation)
        #             halo (and per-layer weight streaming) before scaling L.
        raise ValueError(
            f"TCN block does not fit the per-core VMEM budget "
            f"(~{vmem_est / 2**20:.1f} MiB estimated); reduce L/Bblk or add time tiling.")
    vmem_limit = int(min(max(vmem_est * 3 // 2, 32 * 1024 * 1024),
                         64 * 1024 * 1024))

    # Use per-tap dots when Cpad == 128 (im2col concat stores rival the matmul
    # there); keep the wide im2col matmul when Cpad >= 256.
    use_im2col = Cpad >= 256

    in_specs = [
        pl.BlockSpec((Bblk, pad_rows + Lp, Cpad), lambda b: (b, 0, 0)),
        pl.BlockSpec(prepped["W1s"].shape, lambda b: (0, 0, 0)),
        pl.BlockSpec(prepped["B1s"].shape, lambda b: (0, 0, 0)),
        pl.BlockSpec(prepped["W2s"].shape, lambda b: (0, 0, 0)),
        pl.BlockSpec(prepped["B2s"].shape, lambda b: (0, 0, 0)),
    ]
    args = [x, prepped["W1s"], prepped["B1s"], prepped["W2s"], prepped["B2s"]]

    kern = functools.partial(
        tcn_fused_kernel,
        kernel_size=K,
        dilations=dils,
        has_ds=prepped["has_ds"],
        pad_rows=pad_rows,
        cpad=Cpad,
        cout_pad=cout_pad,
        use_im2col=use_im2col,
    )

    # advisory cost estimate so XLA schedules around the long fused call
    flops = 0
    for layer in range(len(dils)):
        ncols1 = 2 * Cpad if prepped["has_ds"][layer] else Cpad
        flops += 2 * B * Lp * (K * Cpad) * ncols1     # conv1 (+fused downsample)
        flops += 2 * B * Lp * (K * Cpad) * Cpad       # conv2
    bytes_accessed = (int(x.size) * itemsize
                      + B * Lp * cout_pad * itemsize
                      + sum(int(prepped[k].size) * prepped[k].dtype.itemsize
                            for k in ("W1s", "B1s", "W2s", "B2s")))
    cost = pl.CostEstimate(flops=int(flops), transcendentals=0,
                           bytes_accessed=int(bytes_accessed))

    out = pl.pallas_call(
        kern,
        out_shape=jax.ShapeDtypeStruct((B, Lp, cout_pad), cdtype),
        grid_spec=pltpu.PrefetchScalarGridSpec(
            num_scalar_prefetch=0,
            grid=grid,
            in_specs=in_specs,
            out_specs=pl.BlockSpec((Bblk, Lp, cout_pad), lambda b: (b, 0, 0)),
            scratch_shapes=[
                pltpu.VMEM((Bblk, Lp + pad_rows, Cpad), cdtype),
            ],
        ),
        compiler_params=pltpu.CompilerParams(
            dimension_semantics=("parallel",),     # shardable across v7x's 2 TCs
            vmem_limit_bytes=vmem_limit,
        ),
        cost_estimate=cost,
    )(*args)

    out = out[:, :L, :prepped["cout_last"]]           # drop time/channel padding
    return jnp.transpose(out, (0, 2, 1)).astype(jnp.float32)   # back to (B, C, L)


# ----------------------------- pure-JAX reference ----------------------------
def tcn_forward_ref(x_ncl, params, kernel_size):
    x = x_ncl
    L = x_ncl.shape[2]
    for i, (w1, b1, w2, b2, wd, bd) in enumerate(params):
        d = 2 ** i
        pad = (kernel_size - 1) * d

        def conv(inp, w, b):
            out = lax.conv_general_dilated(
                inp, w, window_strides=(1,), padding=[(pad, pad)],
                rhs_dilation=(d,), dimension_numbers=("NCH", "OIH", "NCH"))
            out = out + b[None, :, None]
            return out[:, :, :L]                   # Chomp1d (safe for pad == 0)

        h = jnp.maximum(conv(x, w1, b1), 0.0)
        h2 = jnp.maximum(conv(h, w2, b2), 0.0)
        if wd is not None:
            res = lax.conv_general_dilated(
                x, wd, window_strides=(1,), padding="VALID",
                dimension_numbers=("NCH", "OIH", "NCH")) + bd[None, :, None]
        else:
            res = x
        x = jnp.maximum(h2 + res, 0.0)
    return x


# ----------------------------------- main ------------------------------------
if __name__ == "__main__":
    B, C_in, L = 2, 4, 16
    num_channels = [4, 8]     # level 0: 4->4 (identity residual), level 1: 4->8 (1x1 downsample)
    kernel_size = 2

    key = jax.random.PRNGKey(0)
    kx, kp = jax.random.split(key)
    x = jax.random.normal(kx, (B, C_in, L), jnp.float32)   # PyTorch NCL input
    params = init_tcn_params(kp, C_in, num_channels, kernel_size)

    ref = tcn_forward_ref(x, params, kernel_size)

    # f32 compute path: tight check against the dense-conv reference.
    prepped32 = prepare_tcn_kernel_params(params, C_in, kernel_size,
                                          compute_dtype=jnp.float32)
    out32 = jax.block_until_ready(tcn_forward_pallas(x, prepped32))
    assert out32.shape == (B, num_channels[-1], L), out32.shape
    assert jnp.allclose(out32, ref, atol=1e-4, rtol=1e-4), \
        float(jnp.max(jnp.abs(out32 - ref)))

    # bf16 default path (bf16 weights/activations, f32 MXU accumulation and
    # epilogue, bf16 writeback): loose sanity check — error compounds with depth.
    prepped16 = prepare_tcn_kernel_params(params, C_in, kernel_size)   # bf16 default
    out16 = jax.block_until_ready(tcn_forward_pallas(x, prepped16))
    assert out16.shape == (B, num_channels[-1], L), out16.shape
    assert jnp.allclose(out16, ref, atol=1e-1, rtol=1e-1), \
        float(jnp.max(jnp.abs(out16 - ref)))

    print("KERNEL_OK")
</pallas_src>

<mosaic_0001>
module attributes {stable_mosaic.version = 11 : i64} {
  func.func @tcn_fused_kernel(%arg0: i32, %arg1: memref<1x24x128xf32, #tpu.memory_space<vmem>>, %arg2: memref<2x256x256xf32, #tpu.memory_space<vmem>>, %arg3: memref<2x1x256xf32, #tpu.memory_space<vmem>>, %arg4: memref<2x256x128xf32, #tpu.memory_space<vmem>>, %arg5: memref<2x1x128xf32, #tpu.memory_space<vmem>>, %arg6: memref<1x16x128xf32, #tpu.memory_space<vmem>>, %arg7: memref<1x24x128xf32, #tpu.memory_space<vmem>>) attributes {dimension_semantics = [#tpu.dimension_semantics<parallel>], iteration_bounds = array<i64: 2>, scalar_prefetch = 0 : i64, scratch_operands = 1 : i64, tpu.core_type = #tpu.core_type<tc>, window_params = [{transform_indices = @transform_0, window_bounds = array<i64: 1, 24, 128>}, {pipeline_mode = #tpu.pipeline_mode<synchronous>, transform_indices = @transform_1, window_bounds = array<i64: 2, 256, 256>}, {pipeline_mode = #tpu.pipeline_mode<synchronous>, transform_indices = @transform_2, window_bounds = array<i64: 2, 1, 256>}, {pipeline_mode = #tpu.pipeline_mode<synchronous>, transform_indices = @transform_3, window_bounds = array<i64: 2, 256, 128>}, {pipeline_mode = #tpu.pipeline_mode<synchronous>, transform_indices = @transform_4, window_bounds = array<i64: 2, 1, 128>}, {transform_indices = @transform_5, window_bounds = array<i64: 1, 16, 128>}]} {
    %cst = arith.constant 0.000000e+00 : f32
    %0 = vector.broadcast %cst : f32 to vector<1x8x128xf32>
    %c0 = arith.constant 0 : index
    %c0_0 = arith.constant 0 : index
    %c0_1 = arith.constant 0 : index
    %1 = vector.load %arg7[%c0, %c0_0, %c0_1] : memref<1x24x128xf32, #tpu.memory_space<vmem>>, vector<1x8x128xf32>
    tpu.vector_store %arg7[%c0, %c0_0, %c0_1], %0 {strides = array<i32>} : memref<1x24x128xf32, #tpu.memory_space<vmem>>, vector<1x8x128xf32>,
    %c0_2 = arith.constant 0 : index
    %c0_3 = arith.constant 0 : index
    %c0_4 = arith.constant 0 : index
    %2 = vector.load %arg3[%c0_2, %c0_3, %c0_4] : memref<2x1x256xf32, #tpu.memory_space<vmem>>, vector<1x1x128xf32>
    %3 = vector.shape_cast %2 : vector<1x1x128xf32> to vector<1x128xf32>
    %cst_5 = arith.constant 0.000000e+00 : f32
    %4 = vector.broadcast %cst_5 : f32 to vector<16x128xf32>
    %c0_6 = arith.constant 0 : index
    %c7 = arith.constant 7 : index
    %c0_7 = arith.constant 0 : index
    %5 = vector.load %arg1[%c0_6, %c7, %c0_7] : memref<1x24x128xf32, #tpu.memory_space<vmem>>, vector<1x16x128xf32>
    %6 = vector.shape_cast %5 : vector<1x16x128xf32> to vector<16x128xf32>
    %c0_8 = arith.constant 0 : index
    %c0_9 = arith.constant 0 : index
    %c0_10 = arith.constant 0 : index
    %7 = vector.load %arg2[%c0_8, %c0_9, %c0_10] : memref<2x256x256xf32, #tpu.memory_space<vmem>>, vector<1x128x128xf32>
    %8 = vector.shape_cast %7 : vector<1x128x128xf32> to vector<128x128xf32>
    %cst_11 = arith.constant dense<0.000000e+00> : vector<16x128xf32>
    %9 = tpu.matmul %6, %8, %cst_11 {dimension_numbers = #tpu.dot_dimension_numbers<[1], [0], [0], [1], [0, 0, 1, 1], [], []>} : vector<16x128xf32>, vector<128x128xf32>, vector<16x128xf32> -> vector<16x128xf32>
    %10 = arith.addf %4, %9 : vector<16x128xf32>
    %c0_12 = arith.constant 0 : index
    %c8 = arith.constant 8 : index
    %c0_13 = arith.constant 0 : index
    %11 = vector.load %arg1[%c0_12, %c8, %c0_13] : memref<1x24x128xf32, #tpu.memory_space<vmem>>, vector<1x16x128xf32>
    %12 = vector.shape_cast %11 : vector<1x16x128xf32> to vector<16x128xf32>
    %c0_14 = arith.constant 0 : index
    %c128 = arith.constant 128 : index
    %c0_15 = arith.constant 0 : index
    %13 = vector.load %arg2[%c0_14, %c128, %c0_15] : memref<2x256x256xf32, #tpu.memory_space<vmem>>, vector<1x128x128xf32>
    %14 = vector.shape_cast %13 : vector<1x128x128xf32> to vector<128x128xf32>
    %cst_16 = arith.constant dense<0.000000e+00> : vector<16x128xf32>
    %15 = tpu.matmul %12, %14, %cst_16 {dimension_numbers = #tpu.dot_dimension_numbers<[1], [0], [0], [1], [0, 0, 1, 1], [], []>} : vector<16x128xf32>, vector<128x128xf32>, vector<16x128xf32> -> vector<16x128xf32>
    %16 = arith.addf %10, %15 : vector<16x128xf32>
    %17 = vector.broadcast %3 : vector<1x128xf32> to vector<16x128xf32>
    %18 = arith.addf %16, %17 : vector<16x128xf32>
    %cst_17 = arith.constant 0.000000e+00 : f32
    %19 = vector.broadcast %cst_17 : f32 to vector<16x128xf32>
    %20 = arith.maximumf %18, %19 : vector<16x128xf32>
    %c0_18 = arith.constant 0 : index
    %c8_19 = arith.constant 8 : index
    %c0_20 = arith.constant 0 : index
    %21 = vector.load %arg1[%c0_18, %c8_19, %c0_20] : memref<1x24x128xf32, #tpu.memory_space<vmem>>, vector<1x16x128xf32>
    %22 = vector.shape_cast %21 : vector<1x16x128xf32> to vector<16x128xf32>
    %23 = vector.shape_cast %20 : vector<16x128xf32> to vector<1x16x128xf32>
    %c0_21 = arith.constant 0 : index
    %c8_22 = arith.constant 8 : index
    %c0_23 = arith.constant 0 : index
    %24 = vector.load %arg7[%c0_21, %c8_22, %c0_23] : memref<1x24x128xf32, #tpu.memory_space<vmem>>, vector<1x16x128xf32>
    tpu.vector_store %arg7[%c0_21, %c8_22, %c0_23], %23 {strides = array<i32>} : memref<1x24x128xf32, #tpu.memory_space<vmem>>, vector<1x16x128xf32>,
    %c0_24 = arith.constant 0 : index
    %c0_25 = arith.constant 0 : index
    %c0_26 = arith.constant 0 : index
    %25 = vector.load %arg5[%c0_24, %c0_25, %c0_26] : memref<2x1x128xf32, #tpu.memory_space<vmem>>, vector<1x1x128xf32>
    %26 = vector.shape_cast %25 : vector<1x1x128xf32> to vector<1x128xf32>
    %cst_27 = arith.constant 0.000000e+00 : f32
    %27 = vector.broadcast %cst_27 : f32 to vector<16x128xf32>
    %c0_28 = arith.constant 0 : index
    %c7_29 = arith.constant 7 : index
    %c0_30 = arith.constant 0 : index
    %28 = vector.load %arg7[%c0_28, %c7_29, %c0_30] : memref<1x24x128xf32, #tpu.memory_space<vmem>>, vector<1x16x128xf32>
    %29 = vector.shape_cast %28 : vector<1x16x128xf32> to vector<16x128xf32>
    %c0_31 = arith.constant 0 : index
    %c0_32 = arith.constant 0 : index
    %c0_33 = arith.constant 0 : index
    %30 = vector.load %arg4[%c0_31, %c0_32, %c0_33] : memref<2x256x128xf32, #tpu.memory_space<vmem>>, vector<1x128x128xf32>
    %31 = vector.shape_cast %30 : vector<1x128x128xf32> to vector<128x128xf32>
    %cst_34 = arith.constant dense<0.000000e+00> : vector<16x128xf32>
    %32 = tpu.matmul %29, %31, %cst_34 {dimension_numbers = #tpu.dot_dimension_numbers<[1], [0], [0], [1], [0, 0, 1, 1], [], []>} : vector<16x128xf32>, vector<128x128xf32>, vector<16x128xf32> -> vector<16x128xf32>
    %33 = arith.addf %27, %32 : vector<16x128xf32>
    %c0_35 = arith.constant 0 : index
    %c8_36 = arith.constant 8 : index
    %c0_37 = arith.constant 0 : index
    %34 = vector.load %arg7[%c0_35, %c8_36, %c0_37] : memref<1x24x128xf32, #tpu.memory_space<vmem>>, vector<1x16x128xf32>
    %35 = vector.shape_cast %34 : vector<1x16x128xf32> to vector<16x128xf32>
    %c0_38 = arith.constant 0 : index
    %c128_39 = arith.constant 128 : index
    %c0_40 = arith.constant 0 : index
    %36 = vector.load %arg4[%c0_38, %c128_39, %c0_40] : memref<2x256x128xf32, #tpu.memory_space<vmem>>, vector<1x128x128xf32>
    %37 = vector.shape_cast %36 : vector<1x128x128xf32> to vector<128x128xf32>
    %cst_41 = arith.constant dense<0.000000e+00> : vector<16x128xf32>
    %38 = tpu.matmul %35, %37, %cst_41 {dimension_numbers = #tpu.dot_dimension_numbers<[1], [0], [0], [1], [0, 0, 1, 1], [], []>} : vector<16x128xf32>, vector<128x128xf32>, vector<16x128xf32> -> vector<16x128xf32>
    %39 = arith.addf %33, %38 : vector<16x128xf32>
    %40 = vector.broadcast %26 : vector<1x128xf32> to vector<16x128xf32>
    %41 = arith.addf %39, %40 : vector<16x128xf32>
    %cst_42 = arith.constant 0.000000e+00 : f32
    %42 = vector.broadcast %cst_42 : f32 to vector<16x128xf32>
    %43 = arith.maximumf %41, %42 : vector<16x128xf32>
    %44 = arith.addf %43, %22 : vector<16x128xf32>
    %cst_43 = arith.constant 0.000000e+00 : f32
    %45 = vector.broadcast %cst_43 : f32 to vector<16x128xf32>
    %46 = arith.maximumf %44, %45 : vector<16x128xf32>
    %47 = vector.shape_cast %46 : vector<16x128xf32> to vector<1x16x128xf32>
    %c0_44 = arith.constant 0 : index
    %c8_45 = arith.constant 8 : index
    %c0_46 = arith.constant 0 : index
    %48 = vector.load %arg7[%c0_44, %c8_45, %c0_46] : memref<1x24x128xf32, #tpu.memory_space<vmem>>, vector<1x16x128xf32>
    tpu.vector_store %arg7[%c0_44, %c8_45, %c0_46], %47 {strides = array<i32>} : memref<1x24x128xf32, #tpu.memory_space<vmem>>, vector<1x16x128xf32>,
    %c1 = arith.constant 1 : index
    %c0_47 = arith.constant 0 : index
    %c0_48 = arith.constant 0 : index
    %49 = vector.load %arg3[%c1, %c0_47, %c0_48] : memref<2x1x256xf32, #tpu.memory_space<vmem>>, vector<1x1x256xf32>
    %50 = vector.shape_cast %49 : vector<1x1x256xf32> to vector<1x256xf32>
    %cst_49 = arith.constant 0.000000e+00 : f32
    %51 = vector.broadcast %cst_49 : f32 to vector<16x256xf32>
    %c0_50 = arith.constant 0 : index
    %c6 = arith.constant 6 : index
    %c0_51 = arith.constant 0 : index
    %52 = vector.load %arg7[%c0_50, %c6, %c0_51] : memref<1x24x128xf32, #tpu.memory_space<vmem>>, vector<1x16x128xf32>
    %53 = vector.shape_cast %52 : vector<1x16x128xf32> to vector<16x128xf32>
    %c1_52 = arith.constant 1 : index
    %c0_53 = arith.constant 0 : index
    %c0_54 = arith.constant 0 : index
    %54 = vector.load %arg2[%c1_52, %c0_53, %c0_54] : memref<2x256x256xf32, #tpu.memory_space<vmem>>, vector<1x128x256xf32>
    %55 = vector.shape_cast %54 : vector<1x128x256xf32> to vector<128x256xf32>
    %cst_55 = arith.constant dense<0.000000e+00> : vector<16x256xf32>
    %56 = tpu.matmul %53, %55, %cst_55 {dimension_numbers = #tpu.dot_dimension_numbers<[1], [0], [0], [1], [0, 0, 1, 1], [], []>} : vector<16x128xf32>, vector<128x256xf32>, vector<16x256xf32> -> vector<16x256xf32>
    %57 = arith.addf %51, %56 : vector<16x256xf32>
    %c0_56 = arith.constant 0 : index
    %c8_57 = arith.constant 8 : index
    %c0_58 = arith.constant 0 : index
    %58 = vector.load %arg7[%c0_56, %c8_57, %c0_58] : memref<1x24x128xf32, #tpu.memory_space<vmem>>, vector<1x16x128xf32>
    %59 = vector.shape_cast %58 : vector<1x16x128xf32> to vector<16x128xf32>
    %c1_59 = arith.constant 1 : index
    %c128_60 = arith.constant 128 : index
    %c0_61 = arith.constant 0 : index
    %60 = vector.load %arg2[%c1_59, %c128_60, %c0_61] : memref<2x256x256xf32, #tpu.memory_space<vmem>>, vector<1x128x256xf32>
    %61 = vector.shape_cast %60 : vector<1x128x256xf32> to vector<128x256xf32>
    %cst_62 = arith.constant dense<0.000000e+00> : vector<16x256xf32>
    %62 = tpu.matmul %59, %61, %cst_62 {dimension_numbers = #tpu.dot_dimension_numbers<[1], [0], [0], [1], [0, 0, 1, 1], [], []>} : vector<16x128xf32>, vector<128x256xf32>, vector<16x256xf32> -> vector<16x256xf32>
    %63 = arith.addf %57, %62 : vector<16x256xf32>
    %64 = vector.broadcast %50 : vector<1x256xf32> to vector<16x256xf32>
    %65 = arith.addf %63, %64 : vector<16x256xf32>
    %66 = vector.extract_strided_slice %65 {offsets = [0, 0], sizes = [16, 128], strides = [1, 1]} : vector<16x256xf32> to vector<16x128xf32>
    %cst_63 = arith.constant 0.000000e+00 : f32
    %67 = vector.broadcast %cst_63 : f32 to vector<16x128xf32>
    %68 = arith.maximumf %66, %67 : vector<16x128xf32>
    %69 = vector.extract_strided_slice %65 {offsets = [0, 128], sizes = [16, 128], strides = [1, 1]} : vector<16x256xf32> to vector<16x128xf32>
    %70 = vector.shape_cast %68 : vector<16x128xf32> to vector<1x16x128xf32>
    %c0_64 = arith.constant 0 : index
    %c8_65 = arith.constant 8 : index
    %c0_66 = arith.constant 0 : index
    %71 = vector.load %arg7[%c0_64, %c8_65, %c0_66] : memref<1x24x128xf32, #tpu.memory_space<vmem>>, vector<1x16x128xf32>
    tpu.vector_store %arg7[%c0_64, %c8_65, %c0_66], %70 {strides = array<i32>} : memref<1x24x128xf32, #tpu.memory_space<vmem>>, vector<1x16x128xf32>,
    %c1_67 = arith.constant 1 : index
    %c0_68 = arith.constant 0 : index
    %c0_69 = arith.constant 0 : index
    %72 = vector.load %arg5[%c1_67, %c0_68, %c0_69] : memref<2x1x128xf32, #tpu.memory_space<vmem>>, vector<1x1x128xf32>
    %73 = vector.shape_cast %72 : vector<1x1x128xf32> to vector<1x128xf32>
    %cst_70 = arith.constant 0.000000e+00 : f32
    %74 = vector.broadcast %cst_70 : f32 to vector<16x128xf32>
    %c0_71 = arith.constant 0 : index
    %c6_72 = arith.constant 6 : index
    %c0_73 = arith.constant 0 : index
    %75 = vector.load %arg7[%c0_71, %c6_72, %c0_73] : memref<1x24x128xf32, #tpu.memory_space<vmem>>, vector<1x16x128xf32>
    %76 = vector.shape_cast %75 : vector<1x16x128xf32> to vector<16x128xf32>
    %c1_74 = arith.constant 1 : index
    %c0_75 = arith.constant 0 : index
    %c0_76 = arith.constant 0 : index
    %77 = vector.load %arg4[%c1_74, %c0_75, %c0_76] : memref<2x256x128xf32, #tpu.memory_space<vmem>>, vector<1x128x128xf32>
    %78 = vector.shape_cast %77 : vector<1x128x128xf32> to vector<128x128xf32>
    %cst_77 = arith.constant dense<0.000000e+00> : vector<16x128xf32>
    %79 = tpu.matmul %76, %78, %cst_77 {dimension_numbers = #tpu.dot_dimension_numbers<[1], [0], [0], [1], [0, 0, 1, 1], [], []>} : vector<16x128xf32>, vector<128x128xf32>, vector<16x128xf32> -> vector<16x128xf32>
    %80 = arith.addf %74, %79 : vector<16x128xf32>
    %c0_78 = arith.constant 0 : index
    %c8_79 = arith.constant 8 : index
    %c0_80 = arith.constant 0 : index
    %81 = vector.load %arg7[%c0_78, %c8_79, %c0_80] : memref<1x24x128xf32, #tpu.memory_space<vmem>>, vector<1x16x128xf32>
    %82 = vector.shape_cast %81 : vector<1x16x128xf32> to vector<16x128xf32>
    %c1_81 = arith.constant 1 : index
    %c128_82 = arith.constant 128 : index
    %c0_83 = arith.constant 0 : index
    %83 = vector.load %arg4[%c1_81, %c128_82, %c0_83] : memref<2x256x128xf32, #tpu.memory_space<vmem>>, vector<1x128x128xf32>
    %84 = vector.shape_cast %83 : vector<1x128x128xf32> to vector<128x128xf32>
    %cst_84 = arith.constant dense<0.000000e+00> : vector<16x128xf32>
    %85 = tpu.matmul %82, %84, %cst_84 {dimension_numbers = #tpu.dot_dimension_numbers<[1], [0], [0], [1], [0, 0, 1, 1], [], []>} : vector<16x128xf32>, vector<128x128xf32>, vector<16x128xf32> -> vector<16x128xf32>
    %86 = arith.addf %80, %85 : vector<16x128xf32>
    %87 = vector.broadcast %73 : vector<1x128xf32> to vector<16x128xf32>
    %88 = arith.addf %86, %87 : vector<16x128xf32>
    %cst_85 = arith.constant 0.000000e+00 : f32
    %89 = vector.broadcast %cst_85 : f32 to vector<16x128xf32>
    %90 = arith.maximumf %88, %89 : vector<16x128xf32>
    %91 = arith.addf %90, %69 : vector<16x128xf32>
    %cst_86 = arith.constant 0.000000e+00 : f32
    %92 = vector.broadcast %cst_86 : f32 to vector<16x128xf32>
    %93 = arith.maximumf %91, %92 : vector<16x128xf32>
    %94 = vector.shape_cast %93 : vector<16x128xf32> to vector<1x16x128xf32>
    %c0_87 = arith.constant 0 : index
    %c0_88 = arith.constant 0 : index
    %c0_89 = arith.constant 0 : index
    %95 = vector.load %arg6[%c0_87, %c0_88, %c0_89] : memref<1x16x128xf32, #tpu.memory_space<vmem>>, vector<1x16x128xf32>
    tpu.vector_store %arg6[%c0_87, %c0_88, %c0_89], %94 {strides = array<i32>} : memref<1x16x128xf32, #tpu.memory_space<vmem>>, vector<1x16x128xf32>,
    return
  }
  func.func @transform_0(%arg0: i32) -> (i32, i32, i32) {
    %c0_i32 = arith.constant 0 : i32
    %c0_i32_0 = arith.constant 0 : i32
    %c0_i32_1 = arith.constant 0 : i32
    return %arg0, %c0_i32, %c0_i32_0 : i32, i32, i32
  }
  func.func @transform_1(%arg0: i32) -> (i32, i32, i32) {
    %c0_i32 = arith.constant 0 : i32
    %c0_i32_0 = arith.constant 0 : i32
    %c0_i32_1 = arith.constant 0 : i32
    %c0_i32_2 = arith.constant 0 : i32
    return %c0_i32, %c0_i32_0, %c0_i32_1 : i32, i32, i32
  }
  func.func @transform_2(%arg0: i32) -> (i32, i32, i32) {
    %c0_i32 = arith.constant 0 : i32
    %c0_i32_0 = arith.constant 0 : i32
    %c0_i32_1 = arith.constant 0 : i32
    %c0_i32_2 = arith.constant 0 : i32
    return %c0_i32, %c0_i32_0, %c0_i32_1 : i32, i32, i32
  }
  func.func @transform_3(%arg0: i32) -> (i32, i32, i32) {
    %c0_i32 = arith.constant 0 : i32
    %c0_i32_0 = arith.constant 0 : i32
    %c0_i32_1 = arith.constant 0 : i32
    %c0_i32_2 = arith.constant 0 : i32
    return %c0_i32, %c0_i32_0, %c0_i32_1 : i32, i32, i32
  }
  func.func @transform_4(%arg0: i32) -> (i32, i32, i32) {
    %c0_i32 = arith.constant 0 : i32
    %c0_i32_0 = arith.constant 0 : i32
    %c0_i32_1 = arith.constant 0 : i32
    %c0_i32_2 = arith.constant 0 : i32
    return %c0_i32, %c0_i32_0, %c0_i32_1 : i32, i32, i32
  }
  func.func @transform_5(%arg0: i32) -> (i32, i32, i32) {
    %c0_i32 = arith.constant 0 : i32
    %c0_i32_0 = arith.constant 0 : i32
    %c0_i32_1 = arith.constant 0 : i32
    return %arg0, %c0_i32, %c0_i32_0 : i32, i32, i32
  }
}

</mosaic_0001>

<bundles_post_ra>
// kernel: tpu_custom_call.1
= control target key start
LH: loop header
LB: loop body
LE: loop exit
PB: predicated region body
PF: predicated region fallthrough
CT: control target
= control target key end

     0   :  { %s1442_s0 = inlined_call_operand.hbm [shape: f32[2,24,128], index: 0, kind: input, shape index: {}]   ;;  %s1443_s1 = inlined_call_operand.hbm [shape: f32[2,256,256], index: 1, kind: input, shape index: {}]   ;;  %s1444_s2 = inlined_call_operand.hbm [shape: f32[2,1,256], index: 2, kind: input, shape index: {}]   ;;  %s1445_s3 = inlined_call_operand.hbm [shape: f32[2,256,128], index: 3, kind: input, shape index: {}]   ;;  %s1446_s4 = inlined_call_operand.vmem [shape: f32[2,1,128], index: 4, kind: input, shape index: {}]   ;;  %s1447_s5 = inlined_call_operand.hbm [shape: f32[2,16,128], index: 5, kind: output, shape index: {}]  }
   0x1   :  { %1450 = sst [smem:[#allocation16_spill]] %s1443_s1 }
   0x2   :  { %10 = vsyncpa [#allocation4], 0 }
   0x3   :  { %12 = vsyncpa [#allocation4 + $0x1], 0 }
   0x4   :  { %13 = vsyncpa [#allocation7], 0 }
   0x5   :  { %14 = vsyncpa [#allocation10], 0 }
   0x6   :  { %15 = vsyncpa [#allocation5], 0 }
   0x7   :  { %17 = vsyncpa [#allocation5 + $0x1], 0  ;;  %s1257_s18 = smov 0   ;;  %s1259_s19 = smov 0  }
   0x8   :  { %s1261_s20 = smov 0   ;;  %s1263_s21 = smov 0  }
   0x9 LB: > { %s1278_s22 = sadd.s32 4294967295, %s1213_s21   ;;  %s876_s23 = sadd.s32 4294967294, %s1213_s21   ;;  %s1213_s21 = sphi %s1263_s21, %s1464_s21   ;;  %s1209_s20 = sphi %s1261_s20, %s1463_s20   ;;  %s1205_s19 = sphi %s1259_s19, %s1462_s19   ;;  %s1201_s18 = sphi %s1257_s18, %s1461_s18  }
   0xa   : > { %p43_p0 = scmp.ne.s32.totalorder %s1205_s19, %s1201_s18  ;;  %p44_p1 = scmp.eq.s32.totalorder %s1278_s22, 0 }
   0xb   : > { %p151_p2 = scmp.eq.s32.totalorder %s1278_s22, 1  ;;  %p157_p3 = scmp.eq.s32.totalorder %s876_s23, 1 }
   0xc   : > { %p1287_p4 = por %p44_p1, %p43_p0  ;;  %p877_p5 = scmp.ge.s32.totalorder %s1213_s21, 1 }
   0xd   : > { %p1292_p6 = por %p157_p3, %p43_p0  ;;  %p164_p7 = scmp.lt.s32.totalorder %s1213_s21, 3 }
   0xe   : > { %s1453_s1 = sld [smem:[#allocation16_spill]]  ;;  %s1215_s30 = smov [#allocation6]  }
   0xf   : > { %p1300_p8 = pnand %p877_p5, %p164_p7  ;;  %s177_s6 = sshll.u32 %s1215_s30, 4  ;;  %s178_s6 = int_to_ptr.vmem [resolvable:$true] %s177_s6 }
  0x10   : > { %s189_s10 = sshll.u32 %s1444_s2, 4  ;;  %s1216_s11 = smov 256   ;;  %s190_s10 = int_to_ptr.hbm [resolvable:$true] %s189_s10 }
  0x11   : > { %p946_p9 = pneg %p1300_p8  ;;  %s1217_s12 = smov 16  }
  0x12   : > { %s1218_s13 = smov [#allocation8]   ;;  %s1219_s15 = smov 32  }
  0x13   : > { %p1308_p10 = pnand %p946_p9, %p44_p1  ;;  %s191_s14 = sshll.u32 %s1218_s13, 4  ;;  %s192_s14 = int_to_ptr.vmem [resolvable:$true] %s191_s14 }
  0x14   : > { %s175_s28 = sshll.u32 %s1453_s1, 4  ;;  %s1220_s16 = smov 2   ;;  %s176_s28 = int_to_ptr.hbm [resolvable:$true] %s175_s28 }
  0x15   : > { %949 = dma.hbm_to_vmem [thread:$0]  (!%p1308_p10), %s176_s28, 16384, %s178_s6, [#allocation7], %s1216_s11, %s1216_s11, %s1217_s12  }
  0x16   : > { %952 = dma.hbm_to_vmem [thread:$0]  (!%p1308_p10), %s190_s10, 64, %s192_s14, [#allocation7], %s1219_s15, %s1219_s15, %s1220_s16  }
  0x17   : > { %s203_s26 = sshll.u32 %s1445_s3, 4  ;;  %s1221_s27 = smov [#allocation9]   ;;  %s204_s26 = int_to_ptr.hbm [resolvable:$true] %s203_s26 }
  0x18   : > { %s205_s28 = sshll.u32 %s1221_s27, 4  ;;  %s1448_s30 = smov 128   ;;  %s206_s28 = int_to_ptr.vmem [resolvable:$true] %s205_s28 }
  0x19   : > { %s1449_s6 = smov 8   ;;  %s1329_s8 = sadd.s32 1, %s1213_s21  }
  0x1a   : > { %955 = dma.hbm_to_vmem [thread:$0]  (!%p1308_p10), %s204_s26, 8192, %s206_s28, [#allocation10], %s1448_s30, %s1448_s30, %s1449_s6  }
  0x1b   : > { %s27_s9 = ssub.s32 %s1213_s21, %s1329_s8  ;;  %s30_s10 = sadd.s32 1, %s1209_s20 }
  0x1c   : > { %p28_p12 = scmp.eq.s32.totalorder %s27_s9, 0  ;;  %p37_p13 = scmp.ne.s32.totalorder %s1209_s20, %s1205_s19 }
  0x1d   : > { %p38_p0 = scmp.eq.s32.totalorder %s1213_s21, 0  ;;  %p967_p3 = scmp.lt.s32.totalorder %s1213_s21, 2 }
  0x1e   : > { %s1339_s11 = scalar_select %p28_p12, %s1209_s20, %s30_s10  }
  0x1f   : > { %p39_p5 = por %p38_p0, %p37_p13  ;;  %p1343_p7 = por %p151_p2, %p37_p13 }
  0x20   : > { %s222_s7 = sand.u32 1, %s1209_s20   ;;  %s928_s13 = smul.u32 24, %s1213_s21 }
  0x21   : > { %s927_s14 = smul.u32 24, %s222_s7  ;;  %p1352_p9 = pnand %p967_p3, %p39_p5 }
  0x22   : > { %s231_s17 = scalar_lea.hbm %s1442_s0, %s928_s13  ;;  %s223_s9 = scalar_lea.sflag [#allocation4], %s222_s7 }
  0x23   : > { %s232_s26 = sshll.u32 %s231_s17, 4  ;;  %s226_s27 = scalar_lea.vmem [#allocation3], %s927_s14  ;;  %s233_s26 = int_to_ptr.hbm [resolvable:$true] %s232_s26 }
  0x24   : > { %s234_s28 = sshll.u32 %s226_s27, 4  ;;  %s1109_s10 = sshra.s32 %s233_s26, 4  ;;  %s235_s28 = int_to_ptr.vmem [resolvable:$true] %s234_s28  ;;  %s1110_s10 = int_to_ptr.hbm [resolvable:$true] %s1109_s10 }
  0x25   : > { %s1111_s30 = scalar_lea.hbm %s1110_s10, 24  ;;  %p1113_p10 = pneg %p1352_p9 }
  0x26   : > { %p1112_p2 = scmp.ne.s32.totalorder %s1110_s10, %s1111_s30  ;;  %s1116_s16 = scalar_lea.hbm %s1442_s0, 48 }
  0x27   : > { %p1117_p0 = scmp.lt.s32.totalorder %s1110_s10, %s1442_s0  ;;  %p1118_p3 = scmp.lt.s32.totalorder %s1116_s16, %s1111_s30 }
  0x28   : > { %p1114_p12 = pnand %p1113_p10, %p1112_p2 }
  0x29   : > { %p1119_p5 = por %p1118_p3, %p1117_p0 }
  0x2a   : > { %p1115_p13 = pneg %p1114_p12 }
  0x2c   : > { %p1120_p11 = pnand %p1119_p5, %p1115_p13 }
  0x2e   : > { %1123 = shalt.err (!%p1120_p11)
}
  0x2f   : > { %s1458_s7 = smov 8   ;;  %s1459_s14 = smov 128  }
  0x30   : > { %959 = dma.hbm_to_vmem [thread:$0]  (!%p1352_p9), %s233_s26, 384, %s235_s28, %s223_s9, %s1459_s14, %s1459_s14, %s1458_s7  }
  0x31   : > { %246 = sbr.rel (%p1300_p8) target bundleno = 682 (0x2aa), region = 40  ;;  %s1372_s17 = sand.u32 (!%p1300_p8), 1, %s1205_s19  }
  0x32   : > { %s929_s1 = smul.u32 (!%p1300_p8), 24, %s1372_s17  ;;  %s249_s30 = scalar_lea.sflag (!%p1300_p8), [#allocation4], %s1372_s17 }
  0x34   : > { %s1376_s6 = scalar_lea.vmem (!%p1300_p8), [#allocation3], %s929_s1 }
  0x36   : > { %1184 = dma.done.wait (%p1287_p4), %s249_s30, 384  }
  0x37   : > { %1186 = vsyncadd (%p1287_p4), %s249_s30, 4294966912 }
  0x38   : > { %1188 = dma.done.wait (%p44_p1), [#allocation7], 16448  }
  0x39   : > { %1190 = vsyncadd (%p44_p1), [#allocation7], 4294950848 }
  0x3a   : > { %1192 = dma.done.wait (%p44_p1), [#allocation10], 8192  }
  0x3b   : > { %1194 = vsyncadd (%p44_p1), [#allocation10], 4294959104  ;;  %v332_v0 = vld [vmem:[#allocation6 + $0x1f0] sm:$0xff]  ;;  %v331_v2 = vld [vmem:[#allocation6 + $0x1e0] sm:$0xff]  ;;  %s887_s27 = sshll.u32 %s1372_s17, 4  ;;  %s894_s9 = sshll.u32 %s1278_s22, 4 }
  0x3c   : > { %v314_v1 = vld [vmem:[#allocation6 + $0xf0] sm:$0xff]  ;;  %333 = vmatpush.msra.mxu0 %v332_v0  ;;  %v313_v3 = vld [vmem:[#allocation6 + $0xe0] sm:$0xff]  ;;  %s294_s28 = scalar_lea.vmem [#allocation11], %s887_s27  ;;  %s770_s15 = scalar_lea.hbm %s1447_s5, %s894_s9 }
  0x3d   : > { %356 = vmatpush.msra.mxu1 %v314_v1  ;;  %v330_v4 = vld [vmem:[#allocation6 + $0x1d0] sm:$0xff]  ;;  %v329_v6 = vld [vmem:[#allocation6 + $0x1c0] sm:$0xff]  ;;  %v1224_v1 = vmov 0.0   ;;  %s771_s16 = sshll.u32 %s294_s28, 4  ;;  %s773_s7 = sshll.u32 %s770_s15, 4  ;;  %s772_s16 = int_to_ptr.vmem [resolvable:$true] %s771_s16  ;;  %s774_s7 = int_to_ptr.hbm [resolvable:$true] %s773_s7 }
  0x3e   : > { %v312_v5 = vld [vmem:[#allocation6 + $0xd0] sm:$0xff]  ;;  %334 = vmatpush.msra.mxu0 %v331_v2  ;;  %v311_v7 = vld [vmem:[#allocation6 + $0xc0] sm:$0xff]  ;;  %295 = vst [vmem:[#allocation2] sm:$0xff] %v1224_v1  ;;  %v502_v1 = vld [vmem:[#allocation6 + $0x268] sm:$0xff]  ;;  %s759_s22 = scalar_lea.sflag [#allocation5], %s1372_s17  ;;  %s1153_s14 = sshra.s32 %s774_s7, 4  ;;  %s1154_s14 = int_to_ptr.hbm [resolvable:$true] %s1153_s14 }
  0x3f   : > { %357 = vmatpush.msra.mxu1 %v313_v3  ;;  %v328_v8 = vld [vmem:[#allocation6 + $0x1b0] sm:$0xff]  ;;  %v327_v10 = vld [vmem:[#allocation6 + $0x1a0] sm:$0xff]  ;;  %s1155_s1 = scalar_lea.hbm %s1154_s14, 16  ;;  %s1159_s24 = scalar_lea.hbm %s1447_s5, 32 }
  0x40   : > { %335 = vmatpush.msra.mxu0 %v330_v4  ;;  %v310_v9 = vld [vmem:[#allocation6 + $0xb0] sm:$0xff]  ;;  %v309_v11 = vld [vmem:[#allocation6 + $0xa0] sm:$0xff]  ;;  %p1156_p1 = scmp.ne.s32.totalorder %s1154_s14, %s1155_s1  ;;  %p1160_p11 = scmp.lt.s32.totalorder %s1154_s14, %s1447_s5 }
  0x41   : > { %358 = vmatpush.msra.mxu1 %v312_v5  ;;  %v326_v12 = vld [vmem:[#allocation6 + $0x190] sm:$0xff]  ;;  %v325_v14 = vld [vmem:[#allocation6 + $0x180] sm:$0xff]  ;;  %p1161_p9 = scmp.lt.s32.totalorder %s1159_s24, %s1155_s1 }
  0x42   : > { %336 = vmatpush.msra.mxu0 %v329_v6  ;;  %v308_v13 = vld [vmem:[#allocation6 + $0x90] sm:$0xff]  ;;  %v307_v15 = vld [vmem:[#allocation6 + $0x80] sm:$0xff]  ;;  %v554_v6 = vld [vmem:[#allocation6 + $0x3f8] sm:$0xff]  ;;  %p1157_p4 = pnand %p1156_p1, %p1343_p7 }
  0x43   : > { %359 = vmatpush.msra.mxu1 %v311_v7  ;;  %v424_v16 = vld [vmem:[#allocation9 + $0xf8] sm:$0xff]  ;;  %v423_v18 = vld [vmem:[#allocation9 + $0xf0] sm:$0xff]  ;;  %v422_v22 = vld [vmem:[#allocation9 + $0xe8] sm:$0xff]  ;;  %p1162_p2 = por %p1161_p9, %p1160_p11 }
  0x44   : > { %337 = vmatpush.msra.mxu0 %v328_v8  ;;  %v406_v17 = vld [vmem:[#allocation9 + $0x78] sm:$0xff]  ;;  %v405_v19 = vld [vmem:[#allocation9 + $0x70] sm:$0xff]  ;;  %425 = vmatpush.msra.mxu2 %v424_v16  ;;  %v404_v23 = vld [vmem:[#allocation9 + $0x68] sm:$0xff]  ;;  %p1158_p8 = pneg %p1157_p4 }
  0x45   : > { %360 = vmatpush.msra.mxu1 %v310_v9  ;;  %v324_v20 = vld [vmem:[#allocation6 + $0x170] sm:$0xff]  ;;  %448 = vmatpush.msra.mxu3 %v406_v17  ;;  %v323_v24 = vld [vmem:[#allocation6 + $0x160] sm:$0xff]  ;;  %v520_v8 = vld [vmem:[#allocation6 + $0x2f8] sm:$0xff] }
  0x46   : > { %338 = vmatpush.msra.mxu0 %v327_v10  ;;  %v306_v21 = vld [vmem:[#allocation6 + $0x70] sm:$0xff]  ;;  %v305_v25 = vld [vmem:[#allocation6 + $0x60] sm:$0xff]  ;;  %426 = vmatpush.msra.mxu2 %v423_v18  ;;  %v552_v10 = vld [vmem:[#allocation6 + $0x3e8] sm:$0xff]  ;;  %p1163_p10 = pnand %p1162_p2, %p1158_p8 }
  0x47   : > { %361 = vmatpush.msra.mxu1 %v309_v11  ;;  %449 = vmatpush.msra.mxu3 %v405_v19  ;;  %v421_v26 = vld [vmem:[#allocation9 + $0xe0] sm:$0xff]  ;;  %v322_v28 = vld [vmem:[#allocation6 + $0x150] sm:$0xff]  ;;  %v420_v30 = vld [vmem:[#allocation9 + $0xd8] sm:$0xff] }
  0x48   : > { %339 = vmatpush.msra.mxu0 %v326_v12  ;;  %v403_v27 = vld [vmem:[#allocation9 + $0x60] sm:$0xff]  ;;  %v304_v29 = vld [vmem:[#allocation6 + $0x50] sm:$0xff]  ;;  %427 = vmatpush.msra.mxu2 %v422_v22  ;;  %v402_v31 = vld [vmem:[#allocation9 + $0x58] sm:$0xff] }
  0x49   : > { %362 = vmatpush.msra.mxu1 %v308_v13  ;;  %450 = vmatpush.msra.mxu3 %v404_v23  ;;  %v321_v32 = vld [vmem:[#allocation6 + $0x140] sm:$0xff]  ;;  %v419_v34 = vld [vmem:[#allocation9 + $0xd0] sm:$0xff]  ;;  %v418_v38 = vld [vmem:[#allocation9 + $0xc8] sm:$0xff] }
  0x4a   : > { %340 = vmatpush.msra.mxu0 %v325_v14  ;;  %v303_v33 = vld [vmem:[#allocation6 + $0x40] sm:$0xff]  ;;  %428 = vmatpush.msra.mxu2 %v421_v26  ;;  %v401_v35 = vld [vmem:[#allocation9 + $0x50] sm:$0xff]  ;;  %v400_v39 = vld [vmem:[#allocation9 + $0x48] sm:$0xff] }
  0x4b   : > { %363 = vmatpush.msra.mxu1 %v307_v15  ;;  %451 = vmatpush.msra.mxu3 %v403_v27  ;;  %v320_v36 = vld [vmem:[#allocation6 + $0x130] sm:$0xff]  ;;  %v319_v40 = vld [vmem:[#allocation6 + $0x120] sm:$0xff]  ;;  %v518_v12 = vld [vmem:[#allocation6 + $0x2e8] sm:$0xff] }
  0x4c   : > { %341 = vmatpush.msra.mxu0 %v324_v20  ;;  %v302_v37 = vld [vmem:[#allocation6 + $0x30] sm:$0xff]  ;;  %429 = vmatpush.msra.mxu2 %v420_v30  ;;  %v301_v41 = vld [vmem:[#allocation6 + $0x20] sm:$0xff]  ;;  %v550_v14 = vld [vmem:[#allocation6 + $0x3d8] sm:$0xff] }
  0x4d   : > { %364 = vmatpush.msra.mxu1 %v306_v21  ;;  %452 = vmatpush.msra.mxu3 %v402_v31  ;;  %v417_v42 = vld [vmem:[#allocation9 + $0xc0] sm:$0xff]  ;;  %v318_v44 = vld [vmem:[#allocation6 + $0x110] sm:$0xff]  ;;  %v416_v52 = vld [vmem:[#allocation9 + $0xb8] sm:$0xff] }
  0x4e   : > { %342 = vmatpush.msra.mxu0 %v323_v24  ;;  %430 = vmatpush.msra.mxu2 %v419_v34  ;;  %v399_v43 = vld [vmem:[#allocation9 + $0x40] sm:$0xff]  ;;  %v300_v45 = vld [vmem:[#allocation6 + $0x10] sm:$0xff]  ;;  %v398_v56 = vld [vmem:[#allocation9 + $0x38] sm:$0xff] }
  0x4f   : > { %365 = vmatpush.msra.mxu1 %v305_v25  ;;  %453 = vmatpush.msra.mxu3 %v401_v35  ;;  %v317_v46 = vld [vmem:[#allocation6 + $0x100] sm:$0xff]  ;;  %v1391_v48 = vld [vmem:[%s1376_s6 + $0x8] sm:$0xff]  ;;  %v548_v18 = vld [vmem:[#allocation6 + $0x3c8] sm:$0xff] }
  0x50   : > { %343 = vmatpush.msra.mxu0 %v322_v28  ;;  %431 = vmatpush.msra.mxu2 %v418_v38  ;;  %v299_v47 = vld [vmem:[#allocation6] sm:$0xff]  ;;  %v297_v49 = vld [vmem:[%s1376_s6 + $0x7] sm:$0xff] }
  0x51   : > { %366 = vmatpush.msra.mxu1 %v304_v29  ;;  %454 = vmatpush.msra.mxu3 %v400_v39  ;;  %v1396_v50 = vld [vmem:[%s1376_s6 + $0x10] sm:$0xff]  ;;  %v414_v54 = vld [vmem:[#allocation9 + $0xa8] sm:$0xff] }
  0x52   : > { %344 = vmatpush.msra.mxu0 %v321_v32  ;;  %432 = vmatpush.msra.mxu2 %v417_v42  ;;  %v298_v51 = vld [vmem:[%s1376_s6 + $0xf] sm:$0xff]  ;;  %v396_v60 = vld [vmem:[#allocation9 + $0x28] sm:$0xff] }
  0x53   : > { %367 = vmatpush.msra.mxu1 %v303_v33  ;;  %455 = vmatpush.msra.mxu3 %v399_v43  ;;  %v415_v53 = vld [vmem:[#allocation9 + $0xb0] sm:$0xff]  ;;  %v413_v55 = vld [vmem:[#allocation9 + $0xa0] sm:$0xff]  ;;  %v412_v57 = vld [vmem:[#allocation9 + $0x98] sm:$0xff] }
  0x54   : > { %345 = vmatpush.msra.mxu0 %v320_v36  ;;  %433 = vmatpush.msra.mxu2 %v416_v52  ;;  %v397_v58 = vld [vmem:[#allocation9 + $0x30] sm:$0xff]  ;;  %v410_v61 = vld [vmem:[#allocation9 + $0x88] sm:$0xff]  ;;  %v395_v62 = vld [vmem:[#allocation9 + $0x20] sm:$0xff] }
  0x55   : > { %368 = vmatpush.msra.mxu1 %v302_v37  ;;  %456 = vmatpush.msra.mxu3 %v398_v56  ;;  %v411_v59 = vld [vmem:[#allocation9 + $0x90] sm:$0xff]  ;;  %v409_v63 = vld [vmem:[#allocation9 + $0x80] sm:$0xff]  ;;  %v394_v0 = vld [vmem:[#allocation9 + $0x18] sm:$0xff] }
  0x56   : > { %346 = vmatpush.msra.mxu0 %v319_v40  ;;  %434 = vmatpush.msra.mxu2 %v415_v53  ;;  %v393_v2 = vld [vmem:[#allocation9 + $0x10] sm:$0xff]  ;;  %v392_v3 = vld [vmem:[#allocation9 + $0x8] sm:$0xff]  ;;  %v391_v4 = vld [vmem:[#allocation9] sm:$0xff] }
  0x57   : > { %369 = vmatpush.msra.mxu1 %v301_v41  ;;  %457 = vmatpush.msra.mxu3 %v397_v58  ;;  %v553_v5 = vld [vmem:[#allocation6 + $0x3f0] sm:$0xff]  ;;  %v551_v9 = vld [vmem:[#allocation6 + $0x3e0] sm:$0xff]  ;;  %v516_v16 = vld [vmem:[#allocation6 + $0x2d8] sm:$0xff] }
  0x58   : > { %347 = vmatpush.msra.mxu0 %v318_v44  ;;  %435 = vmatpush.msra.mxu2 %v414_v54  ;;  %v519_v7 = vld [vmem:[#allocation6 + $0x2f0] sm:$0xff]  ;;  %v517_v11 = vld [vmem:[#allocation6 + $0x2e0] sm:$0xff]  ;;  %v514_v20 = vld [vmem:[#allocation6 + $0x2c8] sm:$0xff] }
  0x59   : > { %370 = vmatpush.msra.mxu1 %v300_v45  ;;  %458 = vmatpush.msra.mxu3 %v396_v60  ;;  %v549_v13 = vld [vmem:[#allocation6 + $0x3d0] sm:$0xff]  ;;  %v547_v17 = vld [vmem:[#allocation6 + $0x3c0] sm:$0xff]  ;;  %v546_v22 = vld [vmem:[#allocation6 + $0x3b8] sm:$0xff] }
  0x5a   : > { %348 = vmatpush.msra.mxu0 %v317_v46  ;;  %436 = vmatpush.msra.mxu2 %v413_v55  ;;  %v515_v15 = vld [vmem:[#allocation6 + $0x2d0] sm:$0xff]  ;;  %v513_v19 = vld [vmem:[#allocation6 + $0x2c0] sm:$0xff]  ;;  %v512_v24 = vld [vmem:[#allocation6 + $0x2b8] sm:$0xff] }
  0x5b   : > { %371 = vmatpush.msra.mxu1 %v299_v47  ;;  %349 = vmatmul.f32.vlgmr.msra.gmra.mxu0 %v1391_v48  ;;  %v545_v21 = vld [vmem:[#allocation6 + $0x3b0] sm:$0xff]  ;;  %v1016_v25 = vld [vmem:[#allocation8] ss:$0 sm:$0xff]  ;;  %v544_v27 = vld [vmem:[#allocation6 + $0x3a8] sm:$0xff] }
  0x5c   : > { %372 = vmatmul.f32.vlgmr.msra.gmra.mxu1 %v297_v49  ;;  %437 = vmatpush.msra.mxu2 %v412_v57  ;;  %v511_v23 = vld [vmem:[#allocation6 + $0x2b0] sm:$0xff]  ;;  %v543_v26 = vld [vmem:[#allocation6 + $0x3a0] sm:$0xff]  ;;  %v510_v31 = vld [vmem:[#allocation6 + $0x2a8] sm:$0xff] }
  0x5d   : > { %459 = vmatpush.msra.mxu3 %v395_v62  ;;  %555 = vmatpush.msrb.mxu0 %v553_v5  ;;  %v509_v30 = vld [vmem:[#allocation6 + $0x2a0] sm:$0xff]  ;;  %v541_v42 = vld [vmem:[#allocation6 + $0x390] sm:$0xff]  ;;  %v542_v43 = vld [vmem:[#allocation6 + $0x398] sm:$0xff] }
  0x5e   : > { %438 = vmatpush.msra.mxu2 %v411_v59  ;;  %578 = vmatpush.msrb.mxu1 %v554_v6  ;;  %v539_v44 = vld [vmem:[#allocation6 + $0x380] sm:$0xff]  ;;  %v540_v45 = vld [vmem:[#allocation6 + $0x388] sm:$0xff]  ;;  %v537_v46 = vld [vmem:[#allocation6 + $0x370] sm:$0xff] }
  0x5f   : > { %460 = vmatpush.msra.mxu3 %v394_v0  ;;  %556 = vmatpush.msrb.mxu0 %v551_v9  ;;  %v538_v47 = vld [vmem:[#allocation6 + $0x378] sm:$0xff]  ;;  %v535_v49 = vld [vmem:[#allocation6 + $0x360] sm:$0xff]  ;;  %v507_v52 = vld [vmem:[#allocation6 + $0x290] sm:$0xff] }
  0x60   : > { %439 = vmatpush.msra.mxu2 %v410_v61  ;;  %579 = vmatpush.msrb.mxu1 %v552_v10  ;;  %v508_v53 = vld [vmem:[#allocation6 + $0x298] sm:$0xff]  ;;  %v533_v54 = vld [vmem:[#allocation6 + $0x350] sm:$0xff]  ;;  %v505_v56 = vld [vmem:[#allocation6 + $0x280] sm:$0xff] }
  0x61   : > { %461 = vmatpush.msra.mxu3 %v393_v2  ;;  %557 = vmatpush.msrb.mxu0 %v549_v13  ;;  %v534_v55 = vld [vmem:[#allocation6 + $0x358] sm:$0xff]  ;;  %v506_v57 = vld [vmem:[#allocation6 + $0x288] sm:$0xff]  ;;  %v531_v58 = vld [vmem:[#allocation6 + $0x340] sm:$0xff] }
  0x62   : > { %440 = vmatpush.msra.mxu2 %v409_v63  ;;  %580 = vmatpush.msrb.mxu1 %v550_v14  ;;  %v532_v59 = vld [vmem:[#allocation6 + $0x348] sm:$0xff]  ;;  %v503_v60 = vld [vmem:[#allocation6 + $0x270] sm:$0xff]  ;;  %v504_v61 = vld [vmem:[#allocation6 + $0x278] sm:$0xff] }
  0x63   : > { %352 = vmatmul.f32.gmra.mxu0 %v1396_v50  ;;  %462 = vmatpush.msra.mxu3 %v392_v3  ;;  %v529_v62 = vld [vmem:[#allocation6 + $0x330] sm:$0xff]  ;;  %v530_v63 = vld [vmem:[#allocation6 + $0x338] sm:$0xff]  ;;  %v501_v0 = vld [vmem:[#allocation6 + $0x260] sm:$0xff] }
  0x64   : > { %375 = vmatmul.f32.gmra.mxu1 %v298_v51  ;;  %601 = vmatpush.msrb.mxu2 %v519_v7  ;;  %v536_v51 = vld [vmem:[#allocation6 + $0x368] sm:$0xff]  ;;  %v527_v2 = vld [vmem:[#allocation6 + $0x320] sm:$0xff]  ;;  %v500_v5 = vld [vmem:[#allocation6 + $0x258] sm:$0xff] }
  0x65   : > { %463 = vmatpush.msra.mxu3 %v391_v4  ;;  %558 = vmatpush.msrb.mxu0 %v547_v17  ;;  %v528_v3 = vld [vmem:[#allocation6 + $0x328] sm:$0xff]  ;;  %v499_v4 = vld [vmem:[#allocation6 + $0x250] sm:$0xff]  ;;  %v526_v7 = vld [vmem:[#allocation6 + $0x318] sm:$0xff] }
  0x66   : > { %602 = vmatpush.msrb.mxu2 %v517_v11  ;;  %581 = vmatpush.msrb.mxu1 %v548_v18  ;;  %v525_v6 = vld [vmem:[#allocation6 + $0x310] sm:$0xff]  ;;  %v498_v9 = vld [vmem:[#allocation6 + $0x248] sm:$0xff]  ;;  %v523_v10 = vld [vmem:[#allocation6 + $0x300] sm:$0xff] }
  0x67   : > { %624 = vmatpush.msrb.mxu3 %v520_v8  ;;  %559 = vmatpush.msrb.mxu0 %v545_v21  ;;  %v497_v8 = vld [vmem:[#allocation6 + $0x240] sm:$0xff]  ;;  %v524_v11 = vld [vmem:[#allocation6 + $0x308] sm:$0xff]  ;;  %v496_v13 = vld [vmem:[#allocation6 + $0x238] sm:$0xff] }
  0x68   : > { %603 = vmatpush.msrb.mxu2 %v515_v15  ;;  %582 = vmatpush.msrb.mxu1 %v546_v22  ;;  %v493_v14 = vld [vmem:[#allocation6 + $0x220] sm:$0xff]  ;;  %v494_v15 = vld [vmem:[#allocation6 + $0x228] sm:$0xff]  ;;  %v492_v17 = vld [vmem:[#allocation6 + $0x218] sm:$0xff] }
  0x69   : > { %625 = vmatpush.msrb.mxu3 %v518_v12  ;;  %560 = vmatpush.msrb.mxu0 %v543_v26  ;;  %v495_v12 = vld [vmem:[#allocation6 + $0x230] sm:$0xff]  ;;  %v489_v18 = vld [vmem:[#allocation6 + $0x200] sm:$0xff] }
  0x6a   : > { %604 = vmatpush.msrb.mxu2 %v513_v19  ;;  %583 = vmatpush.msrb.mxu1 %v544_v27  ;;  %v490_v19 = vld [vmem:[#allocation6 + $0x208] sm:$0xff]  ;;  %v680_v21 = vld [vmem:[#allocation9 + $0x178] sm:$0xff]  ;;  %v697_v22 = vld [vmem:[#allocation9 + $0x1f0] sm:$0xff] }
  0x6b   : > { %626 = vmatpush.msrb.mxu3 %v516_v16  ;;  %561 = vmatpush.msrb.mxu0 %v541_v42  ;;  %v491_v16 = vld [vmem:[#allocation6 + $0x210] sm:$0xff]  ;;  %v1017_v27 = vld [vmem:[%s1446_s4] ss:$0 sm:$0xff] }
  0x6c   : > { %605 = vmatpush.msrb.mxu2 %v511_v23  ;;  %584 = vmatpush.msrb.mxu1 %v542_v43  ;;  %v679_v23 = vld [vmem:[#allocation9 + $0x170] sm:$0xff] }
  0x6d   : > { %627 = vmatpush.msrb.mxu3 %v514_v20  ;;  %562 = vmatpush.msrb.mxu0 %v539_v44  ;;  %v698_v20 = vld [vmem:[#allocation9 + $0x1f8] sm:$0xff] }
  0x6e   : > { %606 = vmatpush.msrb.mxu2 %v509_v30  ;;  %585 = vmatpush.msrb.mxu1 %v540_v45 }
  0x6f   : > { %628 = vmatpush.msrb.mxu3 %v512_v24  ;;  %563 = vmatpush.msrb.mxu0 %v537_v46  ;;  %v696_v24 = vld [vmem:[#allocation9 + $0x1e8] sm:$0xff] }
  0x70   : > { %586 = vmatpush.msrb.mxu1 %v538_v47  ;;  %607 = vmatpush.msrb.mxu2 %v507_v52  ;;  %v675_v47 = vld [vmem:[#allocation9 + $0x150] sm:$0xff]  ;;  %v691_v52 = vld [vmem:[#allocation9 + $0x1c0] sm:$0xff] }
  0x71   : > { %629 = vmatpush.msrb.mxu3 %v510_v31  ;;  %564 = vmatpush.msrb.mxu0 %v535_v49  ;;  %v692_v49 = vld [vmem:[#allocation9 + $0x1c8] sm:$0xff] }
  0x72   : > { %587 = vmatpush.msrb.mxu1 %v536_v51  ;;  %608 = vmatpush.msrb.mxu2 %v505_v56  ;;  %v674_v51 = vld [vmem:[#allocation9 + $0x148] sm:$0xff]  ;;  %v687_v56 = vld [vmem:[#allocation9 + $0x1a0] sm:$0xff] }
  0x73   : > { %630 = vmatpush.msrb.mxu3 %v508_v53  ;;  %565 = vmatpush.msrb.mxu0 %v533_v54  ;;  %v673_v53 = vld [vmem:[#allocation9 + $0x140] sm:$0xff]  ;;  %v689_v54 = vld [vmem:[#allocation9 + $0x1b0] sm:$0xff] }
  0x74   : > { %588 = vmatpush.msrb.mxu1 %v534_v55  ;;  %609 = vmatpush.msrb.mxu2 %v503_v60  ;;  %v688_v55 = vld [vmem:[#allocation9 + $0x1a8] sm:$0xff]  ;;  %v685_v60 = vld [vmem:[#allocation9 + $0x190] sm:$0xff] }
  0x75   : > { %631 = vmatpush.msrb.mxu3 %v506_v57  ;;  %566 = vmatpush.msrb.mxu0 %v531_v58  ;;  %v672_v57 = vld [vmem:[#allocation9 + $0x138] sm:$0xff] }
  0x76   : > { %589 = vmatpush.msrb.mxu1 %v532_v59  ;;  %610 = vmatpush.msrb.mxu2 %v501_v0  ;;  %v686_v58 = vld [vmem:[#allocation9 + $0x198] sm:$0xff]  ;;  %v671_v59 = vld [vmem:[#allocation9 + $0x130] sm:$0xff]  ;;  %v683_v0 = vld [vmem:[#allocation9 + $0x180] sm:$0xff] }
  0x77   : > { %632 = vmatpush.msrb.mxu3 %v504_v61  ;;  %567 = vmatpush.msrb.mxu0 %v529_v62  ;;  %v670_v61 = vld [vmem:[#allocation9 + $0x128] sm:$0xff] }
  0x78   : > { %590 = vmatpush.msrb.mxu1 %v530_v63  ;;  %611 = vmatpush.msrb.mxu2 %v499_v4  ;;  %v684_v62 = vld [vmem:[#allocation9 + $0x188] sm:$0xff]  ;;  %v669_v63 = vld [vmem:[#allocation9 + $0x120] sm:$0xff] }
  0x79   : > { %633 = vmatpush.msrb.mxu3 %v502_v1  ;;  %568 = vmatpush.msrb.mxu0 %v527_v2  ;;  %v668_v1 = vld [vmem:[#allocation9 + $0x118] sm:$0xff]  ;;  %v667_v2 = vld [vmem:[#allocation9 + $0x110] sm:$0xff]  ;;  %v665_v4 = vld [vmem:[#allocation9 + $0x100] sm:$0xff] }
  0x7a   : > { %591 = vmatpush.msrb.mxu1 %v528_v3  ;;  %612 = vmatpush.msrb.mxu2 %v497_v8  ;;  %v666_v3 = vld [vmem:[#allocation9 + $0x108] sm:$0xff] }
  0x7b   : > { %634 = vmatpush.msrb.mxu3 %v500_v5  ;;  %569 = vmatpush.msrb.mxu0 %v525_v6  ;;  %v485_v5 = vld [vmem:[#allocation8 + $0x2] sm:$0x3] }
  0x7c   : > { %592 = vmatpush.msrb.mxu1 %v526_v7  ;;  %613 = vmatpush.msrb.mxu2 %v495_v12  ;;  %v648_v7 = vperm.slane %v485_v5, 0 }
  0x7d   : > { %635 = vmatpush.msrb.mxu3 %v498_v9  ;;  %570 = vmatpush.msrb.mxu0 %v523_v10 }
  0x7e   : > { %593 = vmatpush.msrb.mxu1 %v524_v11  ;;  %614 = vmatpush.msrb.mxu2 %v493_v14 }
  0x7f   : > { %636 = vmatpush.msrb.mxu3 %v496_v13  ;;  %699 = vmatpush.msra.mxu0 %v698_v20 }
  0x80   : > { %615 = vmatpush.msrb.mxu2 %v491_v16  ;;  %722 = vmatpush.msra.mxu1 %v680_v21 }
  0x81   : > { %637 = vmatpush.msrb.mxu3 %v494_v15  ;;  %700 = vmatpush.msra.mxu0 %v697_v22 }
  0x82   : > { %616 = vmatpush.msrb.mxu2 %v489_v18  ;;  %723 = vmatpush.msra.mxu1 %v679_v23 }
  0x83   : > { %638 = vmatpush.msrb.mxu3 %v492_v17  ;;  %701 = vmatpush.msra.mxu0 %v696_v24 }
  0x85   : > { %639 = vmatpush.msrb.mxu3 %v490_v19 }
  0xd8   : > { %v350_v28 = vpop.f32.mrf.mxu0 }
  0xd9   : > { %v373_v29 = vpop.f32.mrf.mxu1 }
  0xda   : > { %v374_v32 = vadd.f32 %v373_v29, %v350_v28  ;;  %v695_v28 = vld [vmem:[#allocation9 + $0x1e0] sm:$0xff] }
  0xdb   : > { %v677_v29 = vld [vmem:[#allocation9 + $0x160] sm:$0xff]  ;;  %702 = vmatpush.msra.mxu0 %v695_v28 }
  0xdc   : > { %v382_v33 = vadd.f32 %v1016_v25, %v374_v32  ;;  %v694_v32 = vld [vmem:[#allocation9 + $0x1d8] sm:$0xff] }
  0xdd   : > { %703 = vmatpush.msra.mxu0 %v694_v32 }
  0xde   : > { %v384_v34 = vmax.f32 %v382_v33, 0.0  ;;  %v676_v33 = vld [vmem:[#allocation9 + $0x158] sm:$0xff] }
  0xe0   : > { %386 = vst [vmem:[#allocation2 + $0x8] sm:$0xff] %v384_v34  ;;  %441 = vmatmul.f32.vlgmr.msra.gmra.mxu2 %v384_v34  ;;  %v353_v35 = vpop.f32.mrf.mxu0 }
  0xe1   : > { %v376_v36 = vpop.f32.mrf.mxu1  ;;  %895 = vmatpush.msra.mxu2 %v698_v20 }
  0xe2   : > { %v377_v37 = vadd.f32 %v376_v36, %v353_v35 }
  0xe3   : > { %896 = vmatpush.msra.mxu2 %v697_v22  ;;  %v1018_v22 = vld [vmem:[%s1446_s4 + $0x1] ss:$0 sm:$0xff] }
  0xe4   : > { %v383_v38 = vadd.f32 %v1016_v25, %v377_v37  ;;  %v678_v25 = vld [vmem:[#allocation9 + $0x168] sm:$0xff] }
  0xe5   : > { %724 = vmatpush.msra.mxu1 %v678_v25  ;;  %897 = vmatpush.msra.mxu2 %v696_v24 }
  0xe6   : > { %v385_v39 = vmax.f32 %v383_v38, 0.0 }
  0xe7   : > { %v389_v40 = vld [vmem:[#allocation2 + $0x7] sm:$0xff]  ;;  %725 = vmatpush.msra.mxu1 %v677_v29  ;;  %898 = vmatpush.msra.mxu2 %v695_v28 }
  0xe8   : > { %387 = vst [vmem:[#allocation2 + $0x10] sm:$0xff] %v385_v39  ;;  %464 = vmatmul.f32.vlgmr.msra.gmra.mxu3 %v389_v40  ;;  %444 = vmatmul.f32.gmra.mxu2 %v385_v39 }
  0xe9   : > { %911 = vmatpush.msra.mxu3 %v680_v21  ;;  %726 = vmatpush.msra.mxu1 %v676_v33 }
  0xea   : > { %899 = vmatpush.msra.mxu2 %v694_v32 }
  0xeb   : > { %912 = vmatpush.msra.mxu3 %v679_v23  ;;  %727 = vmatpush.msra.mxu1 %v675_v47 }
  0xed   : > { %913 = vmatpush.msra.mxu3 %v678_v25  ;;  %728 = vmatpush.msra.mxu1 %v674_v51 }
  0xef   : > { %v390_v41 = vld [vmem:[#allocation2 + $0xf] sm:$0xff]  ;;  %914 = vmatpush.msra.mxu3 %v677_v29  ;;  %729 = vmatpush.msra.mxu1 %v673_v53 }
  0xf0   : > { %467 = vmatmul.f32.gmra.mxu3 %v390_v41 }
  0xf1   : > { %915 = vmatpush.msra.mxu3 %v676_v33  ;;  %730 = vmatpush.msra.mxu1 %v672_v57 }
  0xf3   : > { %916 = vmatpush.msra.mxu3 %v675_v47  ;;  %731 = vmatpush.msra.mxu1 %v671_v59 }
  0xf5   : > { %917 = vmatpush.msra.mxu3 %v674_v51  ;;  %732 = vmatpush.msra.mxu1 %v670_v61 }
  0xf7   : > { %918 = vmatpush.msra.mxu3 %v673_v53  ;;  %733 = vmatpush.msra.mxu1 %v669_v63 }
  0xf9   : > { %919 = vmatpush.msra.mxu3 %v672_v57  ;;  %734 = vmatpush.msra.mxu1 %v668_v1 }
  0xfb   : > { %920 = vmatpush.msra.mxu3 %v671_v59  ;;  %735 = vmatpush.msra.mxu1 %v667_v2 }
  0xfd   : > { %921 = vmatpush.msra.mxu3 %v670_v61  ;;  %736 = vmatpush.msra.mxu1 %v666_v3 }
  0xff   : > { %922 = vmatpush.msra.mxu3 %v669_v63  ;;  %737 = vmatpush.msra.mxu1 %v665_v4 }
 0x101   : > { %923 = vmatpush.msra.mxu3 %v668_v1 }
 0x103   : > { %924 = vmatpush.msra.mxu3 %v667_v2 }
 0x105   : > { %925 = vmatpush.msra.mxu3 %v666_v3 }
 0x107   : > { %926 = vmatpush.msra.mxu3 %v665_v4 }
 0x163   : > { %v442_v26 = vpop.f32.mrf.mxu2 }
 0x16b   : > { %v465_v30 = vpop.f32.mrf.mxu3  ;;  %v445_v37 = vpop.f32.mrf.mxu2 }
 0x16c   : > { %v466_v31 = vadd.f32 %v465_v30, %v442_v26  ;;  %v649_v26 = vperm.slane %v485_v5, 1 }
 0x16e   : > { %v474_v34 = vadd.f32 %v1017_v27, %v466_v31 }
 0x170   : > { %v476_v35 = vmax.f32 %v474_v34, 0.0 }
 0x172   : > { %v478_v36 = vadd.f32 %v476_v35, %v1391_v48  ;;  %v693_v48 = vld [vmem:[#allocation9 + $0x1d0] sm:$0xff] }
 0x173   : > { %v468_v38 = vpop.f32.mrf.mxu3  ;;  %704 = vmatpush.msra.mxu0 %v693_v48  ;;  %900 = vmatpush.msra.mxu2 %v693_v48 }
 0x174   : > { %v480_v39 = vmax.f32 %v478_v36, 0.0  ;;  %v469_v40 = vadd.f32 %v468_v38, %v445_v37 }
 0x175   : > { %705 = vmatpush.msra.mxu0 %v692_v49  ;;  %901 = vmatpush.msra.mxu2 %v692_v49 }
 0x176   : > { %482 = vst [vmem:[#allocation2 + $0x8] sm:$0xff] %v480_v39  ;;  %v475_v41 = vadd.f32 %v1017_v27, %v469_v40  ;;  %571 = vmatmul.f32.vlgmr.msrb.gmra.mxu0 %v480_v39  ;;  %594 = vmatmul.f32.vlgmr.msrb.gmra.mxu1 %v480_v39 }
 0x177   : > { %706 = vmatpush.msra.mxu0 %v691_v52  ;;  %902 = vmatpush.msra.mxu2 %v691_v52 }
 0x178   : > { %v477_v42 = vmax.f32 %v475_v41, 0.0 }
 0x17a   : > { %v479_v43 = vadd.f32 %v477_v42, %v1396_v50  ;;  %v690_v50 = vld [vmem:[#allocation9 + $0x1b8] sm:$0xff] }
 0x17b   : > { %707 = vmatpush.msra.mxu0 %v690_v50  ;;  %903 = vmatpush.msra.mxu2 %v690_v50 }
 0x17c   : > { %v481_v44 = vmax.f32 %v479_v43, 0.0 }
 0x17d   : > { %v486_v45 = vld [vmem:[#allocation2 + $0x6] sm:$0xff]  ;;  %708 = vmatpush.msra.mxu0 %v689_v54  ;;  %904 = vmatpush.msra.mxu2 %v689_v54 }
 0x17e   : > { %483 = vst [vmem:[#allocation2 + $0x10] sm:$0xff] %v481_v44  ;;  %617 = vmatmul.f32.vlgmr.msrb.gmra.mxu2 %v486_v45  ;;  %640 = vmatmul.f32.vlgmr.msrb.gmra.mxu3 %v486_v45 }
 0x17f   : > { %574 = vmatmul.f32.gmra.mxu0 %v481_v44  ;;  %597 = vmatmul.f32.gmra.mxu1 %v481_v44 }
 0x180   : > { %709 = vmatpush.msra.mxu0 %v688_v55  ;;  %905 = vmatpush.msra.mxu2 %v688_v55 }
 0x182   : > { %710 = vmatpush.msra.mxu0 %v687_v56  ;;  %906 = vmatpush.msra.mxu2 %v687_v56 }
 0x184   : > { %711 = vmatpush.msra.mxu0 %v686_v58  ;;  %907 = vmatpush.msra.mxu2 %v686_v58 }
 0x185   : > { %v487_v46 = vld [vmem:[#allocation2 + $0xe] sm:$0xff] }
 0x186   : > { %620 = vmatmul.f32.gmra.mxu2 %v487_v46  ;;  %643 = vmatmul.f32.gmra.mxu3 %v487_v46 }
 0x187   : > { %712 = vmatpush.msra.mxu0 %v685_v60  ;;  %908 = vmatpush.msra.mxu2 %v685_v60 }
 0x189   : > { %713 = vmatpush.msra.mxu0 %v684_v62  ;;  %909 = vmatpush.msra.mxu2 %v684_v62 }
 0x18b   : > { %714 = vmatpush.msra.mxu0 %v683_v0  ;;  %910 = vmatpush.msra.mxu2 %v683_v0 }
 0x1f3   : > { %v572_v6 = vpop.f32.mrf.mxu0  ;;  %v595_v19 = vpop.f32.mrf.mxu1 }
 0x1fc   : > { %v575_v12 = vpop.f32.mrf.mxu0  ;;  %v598_v20 = vpop.f32.mrf.mxu1 }
 0x201   : > { %v618_v8 = vpop.f32.mrf.mxu2  ;;  %v641_v21 = vpop.f32.mrf.mxu3 }
 0x202   : > { %v619_v9 = vadd.f32 %v618_v8, %v572_v6  ;;  %v642_v25 = vadd.f32 %v641_v21, %v595_v19 }
 0x204   : > { %v652_v10 = vadd.f32 %v648_v7, %v619_v9  ;;  %v653_v29 = vadd.f32 %v649_v26, %v642_v25 }
 0x206   : > { %v656_v11 = vmax.f32 %v652_v10, 0.0 }
 0x208   : > { %658 = vst [vmem:[#allocation2 + $0x8] sm:$0xff] %v656_v11  ;;  %715 = vmatmul.f32.vlgmr.msra.gmra.mxu0 %v656_v11 }
 0x209   : > { %v621_v13 = vpop.f32.mrf.mxu2  ;;  %v644_v31 = vpop.f32.mrf.mxu3 }
 0x20a   : > { %v622_v14 = vadd.f32 %v621_v13, %v575_v12  ;;  %v645_v36 = vadd.f32 %v644_v31, %v598_v20 }
 0x20c   : > { %v654_v15 = vadd.f32 %v648_v7, %v622_v14  ;;  %v655_v39 = vadd.f32 %v649_v26, %v645_v36 }
 0x20e   : > { %v657_v16 = vmax.f32 %v654_v15, 0.0 }
 0x20f   : > { %v662_v17 = vld [vmem:[#allocation2 + $0x6] sm:$0xff] }
 0x210   : > { %659 = vst [vmem:[#allocation2 + $0x10] sm:$0xff] %v657_v16  ;;  %738 = vmatmul.f32.vlgmr.msra.gmra.mxu1 %v662_v17  ;;  %718 = vmatmul.f32.vlgmr.msra.gmra.mxu2 %v657_v16 }
 0x217   : > { %v663_v18 = vld [vmem:[#allocation2 + $0xe] sm:$0xff] }
 0x218   : > { %741 = vmatmul.f32.vlgmr.msra.gmra.mxu3 %v663_v18 }
 0x285   : > { %v716_v23 = vpop.f32.mrf.mxu0 }
 0x28d   : > { %v739_v24 = vpop.f32.mrf.mxu1 }
 0x28e   : > { %v740_v27 = vadd.f32 %v739_v24, %v716_v23 }
 0x290   : > { %v748_v28 = vadd.f32 %v1018_v22, %v740_v27 }
 0x292   : > { %v750_v30 = vmax.f32 %v748_v28, 0.0 }
 0x293   : > { %v719_v34 = vpop.f32.mrf.mxu2 }
 0x294   : > { %v752_v32 = vadd.f32 %v750_v30, %v653_v29 }
 0x296   : > { %v754_v33 = vmax.f32 %v752_v32, 0.0 }
 0x298   : > { %756 = vst [vmem:[%s294_s28] sm:$0xff] %v754_v33 }
 0x29b   : > { %v742_v35 = vpop.f32.mrf.mxu3 }
 0x29c   : > { %v743_v37 = vadd.f32 %v742_v35, %v719_v34 }
 0x29e   : > { %v749_v38 = vadd.f32 %v1018_v22, %v743_v37 }
 0x2a0   : > { %v751_v40 = vmax.f32 %v749_v38, 0.0 }
 0x2a2   : > { %v753_v41 = vadd.f32 %v751_v40, %v655_v39 }
 0x2a4   : > { %v755_v42 = vmax.f32 %v753_v41, 0.0 }
 0x2a6   : > { %757 = vst [vmem:[%s294_s28 + $0x8] sm:$0xff] %v755_v42 }
 0x2a7   : > { %1166 = shalt.err (!%p1163_p10)
}
 0x2a8   : > { %s1225_s17 = smov 128   ;;  %s1226_s26 = smov 8  }
 0x2a9   : > { %944 = dma.vmem_to_hbm [thread:$0]  (%p1343_p7), %s772_s16, 256, %s774_s7, %s759_s22, %s1225_s17, %s1225_s17, %s1226_s26  }
 0x2aa PF: > { %s788_s27 = sand.u32 1, %s1201_s18   ;;  %p1460_p12 = scmp.ge.s32.totalorder %s1213_s21, 2 }
 0x2ab   : > { %s789_s28 = scalar_lea.sflag [#allocation5], %s788_s27 }
 0x2ac   : > { %p961_p13 = pnand %p1460_p12, %p1292_p6 }
 0x2ae   : > { %p962_p0 = pneg %p961_p13 }
 0x2b0   : > { %1196 = dma.done.wait (%p962_p0), %s789_s28, 256  }
 0x2b1   : > { %1198 = vsyncadd (%p962_p0), %s789_s28, 4294967040  ;;  %p20_p3 = scmp.ge.s32.totalorder %s1329_s8, 4   ;;  %s1461_s18 = smov %s1205_s19 }
 0x2b2   : > { %s1462_s19 = smov %s1209_s20  ;;  %s1463_s20 = smov %s1339_s11 }
 0x2b3   : > { %s1464_s21 = smov %s1329_s8  ;;  %22 = sbr.rel (!%p20_p3) target bundleno = 9 (0x9), region = 101 }
 0x2b8   :  { %795 = vsyncpa [#allocation4], 1 }
 0x2b9   :  { %797 = vsyncpa [#allocation4 + $0x1], 1 }
 0x2ba   :  { %798 = vsyncpa [#allocation7], 1 }
 0x2bb   :  { %799 = vsyncpa [#allocation10], 1 }
 0x2bc   :  { %800 = vsyncpa [#allocation5], 1 }
 0x2bd   :  { %802 = vsyncpa [#allocation5 + $0x1], 1 }

</bundles_post_ra>
